<compile_context>
chip_gen: v7x
topology: tpu7x:2x2x1
jax: 0.10.0
libtpu: 0.0.40
codegen_flags: <defaults>
</compile_context>

<pallas_src>
import functools

import jax
import jax.numpy as jnp
from jax.experimental import pallas as pl
from jax.experimental.pallas import tpu as pltpu

_NEG_BIG = -1e30  # bias for padded action columns -> exp underflows to exactly 0


def _round_up(x: int, m: int) -> int:
    return ((x + m - 1) // m) * m


def policynet_kernel(x_ref, w1_ref, b1_ref, w2_ref, b2_ref, o_ref):
    # Hidden layer: (TB, S) @ (S, Hp) + (1, Hp), ReLU  -- MXU + VPU, f32 accum.
    h = jnp.dot(x_ref[...], w1_ref[...], preferred_element_type=jnp.float32)
    h = jnp.maximum(h + b1_ref[...], 0.0)
    # Action logits: (TB, Hp) @ (Hp, Ap) + (1, Ap). Padded action columns have
    # zero weights and a -1e30 bias, so they contribute nothing to the softmax.
    logits = jnp.dot(h, w2_ref[...], preferred_element_type=jnp.float32)
    logits = logits + b2_ref[...]
    # Numerically stable softmax over the (lane) action axis, fused in-kernel.
    m = jnp.max(logits, axis=-1, keepdims=True)
    e = jnp.exp(logits - m)
    denom = jnp.sum(e, axis=-1, keepdims=True)
    o_ref[...] = (e / denom).astype(o_ref.dtype)


@functools.partial(jax.jit, static_argnames=("block_b",))
def policy_net_forward(x, w1, b1, w2, b2, *, block_b: int = 256):
    """x: (B, state_dim); w1: (state_dim, hidden); b1: (1, hidden);
    w2: (hidden, action_dim); b2: (1, action_dim). Returns (B, action_dim)
    softmax probabilities (rows sum to 1)."""
    B, S = x.shape
    H = w1.shape[1]
    A = w2.shape[1]

    # Lane-dense padding of the hidden and action feature dims (semantics
    # preserving: zero columns/rows, huge-negative bias on padded actions).
    Hp = _round_up(H, 128)
    Ap = _round_up(A, 128)
    w1p = jnp.pad(w1, ((0, 0), (0, Hp - H)))
    b1p = jnp.pad(b1, ((0, 0), (0, Hp - H)))
    w2p = jnp.pad(w2, ((0, Hp - H), (0, Ap - A)))
    b2p = jnp.pad(b2, ((0, 0), (0, Ap - A)), constant_values=_NEG_BIG)

    # Batch tiling: tile of at most `block_b` rows (multiple of 8 sublanes),
    # batch padded up to a whole number of tiles. 2x-buffered x/out tiles at
    # TB=256, Ap=128 f32 are well under the 32 MiB v7x scoped-VMEM budget.
    tb = min(block_b, _round_up(B, 8))
    Bp = _round_up(B, tb)
    xp = jnp.pad(x, ((0, Bp - B), (0, 0)))
    grid = (Bp // tb,)

    out = pl.pallas_call(
        policynet_kernel,
        out_shape=jax.ShapeDtypeStruct((Bp, Ap), x.dtype),
        grid=grid,
        in_specs=[
            pl.BlockSpec((tb, S), lambda i: (i, 0)),    # x: streamed over batch
            pl.BlockSpec((S, Hp), lambda i: (0, 0)),    # w1: resident in VMEM
            pl.BlockSpec((1, Hp), lambda i: (0, 0)),    # b1: resident
            pl.BlockSpec((Hp, Ap), lambda i: (0, 0)),   # w2: resident
            pl.BlockSpec((1, Ap), lambda i: (0, 0)),    # b2: resident
        ],
        out_specs=pl.BlockSpec((tb, Ap), lambda i: (i, 0)),
        compiler_params=pltpu.CompilerParams(
            dimension_semantics=("parallel",),          # shard batch across TCs
            vmem_limit_bytes=32 * 1024 * 1024,          # v7x-safe scoped VMEM
        ),
    )(xp, w1p, b1p, w2p, b2p)

    # Strip batch/action padding.
    return out[:B, :A]


def init_params(key, state_dim, hidden_dim, action_dim, dtype=jnp.float32):
    """Deterministic init mimicking torch.nn.Linear defaults
    (uniform in [-1/sqrt(fan_in), 1/sqrt(fan_in)]); weights stored (in, out)."""
    k1, k2, k3, k4 = jax.random.split(key, 4)
    bound1 = 1.0 / jnp.sqrt(jnp.asarray(state_dim, dtype))
    bound2 = 1.0 / jnp.sqrt(jnp.asarray(hidden_dim, dtype))
    w1 = jax.random.uniform(k1, (state_dim, hidden_dim), dtype, -bound1, bound1)
    b1 = jax.random.uniform(k2, (1, hidden_dim), dtype, -bound1, bound1)
    w2 = jax.random.uniform(k3, (hidden_dim, action_dim), dtype, -bound2, bound2)
    b2 = jax.random.uniform(k4, (1, action_dim), dtype, -bound2, bound2)
    return w1, b1, w2, b2


if __name__ == "__main__":
    key = jax.random.PRNGKey(0)
    state_dim, hidden_dim, action_dim, batch = 4, 32, 2, 8

    k_x, k_p = jax.random.split(key)
    x = jax.random.normal(k_x, (batch, state_dim), jnp.float32)
    w1, b1, w2, b2 = init_params(k_p, state_dim, hidden_dim, action_dim)

    out = policy_net_forward(x, w1, b1, w2, b2)
    out = jax.block_until_ready(out)

    # Pure-JAX reference of the same forward semantics (fc1 -> ReLU -> fc2 -> softmax).
    logits_ref = jnp.maximum(x @ w1 + b1, 0.0) @ w2 + b2
    ref = jax.nn.softmax(logits_ref, axis=1)

    assert out.shape == (batch, action_dim)
    assert jnp.allclose(out, ref, atol=1e-5, rtol=1e-5)
    assert jnp.allclose(jnp.sum(out, axis=1), 1.0, atol=1e-5)

    print("KERNEL_OK")
</pallas_src>

<mosaic_0001>
module attributes {stable_mosaic.version = 11 : i64} {
  func.func @policynet_kernel(%arg0: i32, %arg1: memref<8x4xf32, #tpu.memory_space<vmem>>, %arg2: memref<4x128xf32, #tpu.memory_space<vmem>>, %arg3: memref<1x128xf32, #tpu.memory_space<vmem>>, %arg4: memref<128x128xf32, #tpu.memory_space<vmem>>, %arg5: memref<1x128xf32, #tpu.memory_space<vmem>>, %arg6: memref<8x128xf32, #tpu.memory_space<vmem>>) attributes {dimension_semantics = [#tpu.dimension_semantics<parallel>], iteration_bounds = array<i64: 1>, scalar_prefetch = 0 : i64, scratch_operands = 0 : i64, tpu.core_type = #tpu.core_type<tc>, window_params = [{transform_indices = @transform_0, window_bounds = array<i64: 8, 4>}, {pipeline_mode = #tpu.pipeline_mode<synchronous>, transform_indices = @transform_1, window_bounds = array<i64: 4, 128>}, {pipeline_mode = #tpu.pipeline_mode<synchronous>, transform_indices = @transform_2, window_bounds = array<i64: 1, 128>}, {pipeline_mode = #tpu.pipeline_mode<synchronous>, transform_indices = @transform_3, window_bounds = array<i64: 128, 128>}, {pipeline_mode = #tpu.pipeline_mode<synchronous>, transform_indices = @transform_4, window_bounds = array<i64: 1, 128>}, {transform_indices = @transform_5, window_bounds = array<i64: 8, 128>}]} {
    %c0 = arith.constant 0 : index
    %c0_0 = arith.constant 0 : index
    %0 = vector.load %arg1[%c0, %c0_0] : memref<8x4xf32, #tpu.memory_space<vmem>>, vector<8x4xf32>
    %c0_1 = arith.constant 0 : index
    %c0_2 = arith.constant 0 : index
    %1 = vector.load %arg2[%c0_1, %c0_2] : memref<4x128xf32, #tpu.memory_space<vmem>>, vector<4x128xf32>
    %cst = arith.constant dense<0.000000e+00> : vector<8x128xf32>
    %2 = tpu.matmul %0, %1, %cst {dimension_numbers = #tpu.dot_dimension_numbers<[1], [0], [0], [1], [0, 0, 1, 1], [], []>} : vector<8x4xf32>, vector<4x128xf32>, vector<8x128xf32> -> vector<8x128xf32>
    %c0_3 = arith.constant 0 : index
    %c0_4 = arith.constant 0 : index
    %3 = vector.load %arg3[%c0_3, %c0_4] : memref<1x128xf32, #tpu.memory_space<vmem>>, vector<1x128xf32>
    %4 = vector.broadcast %3 : vector<1x128xf32> to vector<8x128xf32>
    %5 = arith.addf %2, %4 : vector<8x128xf32>
    %cst_5 = arith.constant 0.000000e+00 : f32
    %6 = vector.broadcast %cst_5 : f32 to vector<8x128xf32>
    %7 = arith.maximumf %5, %6 : vector<8x128xf32>
    %c0_6 = arith.constant 0 : index
    %c0_7 = arith.constant 0 : index
    %8 = vector.load %arg4[%c0_6, %c0_7] : memref<128x128xf32, #tpu.memory_space<vmem>>, vector<128x128xf32>
    %cst_8 = arith.constant dense<0.000000e+00> : vector<8x128xf32>
    %9 = tpu.matmul %7, %8, %cst_8 {dimension_numbers = #tpu.dot_dimension_numbers<[1], [0], [0], [1], [0, 0, 1, 1], [], []>} : vector<8x128xf32>, vector<128x128xf32>, vector<8x128xf32> -> vector<8x128xf32>
    %c0_9 = arith.constant 0 : index
    %c0_10 = arith.constant 0 : index
    %10 = vector.load %arg5[%c0_9, %c0_10] : memref<1x128xf32, #tpu.memory_space<vmem>>, vector<1x128xf32>
    %11 = vector.broadcast %10 : vector<1x128xf32> to vector<8x128xf32>
    %12 = arith.addf %9, %11 : vector<8x128xf32>
    %cst_11 = arith.constant dense<0xFF800000> : vector<8xf32>
    %13 = vector.multi_reduction <maximumf>, %12, %cst_11 [1] : vector<8x128xf32> to vector<8xf32>
    %14 = vector.shape_cast %13 : vector<8xf32> to vector<8x1xf32>
    %15 = vector.broadcast %14 : vector<8x1xf32> to vector<8x128xf32>
    %16 = arith.subf %12, %15 : vector<8x128xf32>
    %17 = math.exp %16 : vector<8x128xf32>
    %cst_12 = arith.constant dense<0.000000e+00> : vector<8xf32>
    %18 = vector.multi_reduction <add>, %17, %cst_12 [1] : vector<8x128xf32> to vector<8xf32>
    %19 = vector.shape_cast %18 : vector<8xf32> to vector<8x1xf32>
    %20 = vector.broadcast %19 : vector<8x1xf32> to vector<8x128xf32>
    %21 = arith.divf %17, %20 : vector<8x128xf32>
    %c0_13 = arith.constant 0 : index
    %c0_14 = arith.constant 0 : index
    %22 = vector.load %arg6[%c0_13, %c0_14] : memref<8x128xf32, #tpu.memory_space<vmem>>, vector<8x128xf32>
    tpu.vector_store %arg6[%c0_13, %c0_14], %21 {strides = array<i32>} : memref<8x128xf32, #tpu.memory_space<vmem>>, vector<8x128xf32>,
    return
  }
  func.func @transform_0(%arg0: i32) -> (i32, i32) {
    %c0_i32 = arith.constant 0 : i32
    %c0_i32_0 = arith.constant 0 : i32
    return %arg0, %c0_i32 : i32, i32
  }
  func.func @transform_1(%arg0: i32) -> (i32, i32) {
    %c0_i32 = arith.constant 0 : i32
    %c0_i32_0 = arith.constant 0 : i32
    %c0_i32_1 = arith.constant 0 : i32
    return %c0_i32, %c0_i32_0 : i32, i32
  }
  func.func @transform_2(%arg0: i32) -> (i32, i32) {
    %c0_i32 = arith.constant 0 : i32
    %c0_i32_0 = arith.constant 0 : i32
    %c0_i32_1 = arith.constant 0 : i32
    return %c0_i32, %c0_i32_0 : i32, i32
  }
  func.func @transform_3(%arg0: i32) -> (i32, i32) {
    %c0_i32 = arith.constant 0 : i32
    %c0_i32_0 = arith.constant 0 : i32
    %c0_i32_1 = arith.constant 0 : i32
    return %c0_i32, %c0_i32_0 : i32, i32
  }
  func.func @transform_4(%arg0: i32) -> (i32, i32) {
    %c0_i32 = arith.constant 0 : i32
    %c0_i32_0 = arith.constant 0 : i32
    %c0_i32_1 = arith.constant 0 : i32
    return %c0_i32, %c0_i32_0 : i32, i32
  }
  func.func @transform_5(%arg0: i32) -> (i32, i32) {
    %c0_i32 = arith.constant 0 : i32
    %c0_i32_0 = arith.constant 0 : i32
    return %arg0, %c0_i32 : i32, i32
  }
}

</mosaic_0001>

<bundles_post_ra>
// kernel: policy_net_forward.1
= control target key start
LH: loop header
LB: loop body
LE: loop exit
PB: predicated region body
PF: predicated region fallthrough
CT: control target
= control target key end

     0   :  { %vm33_vm0 = vcmask 1043456   ;;  %vm29_vm1 = vcmask 31744   ;;  %v309_v0 = vmov 0.0   ;;  %vm310_vm2 = vmmov 0   ;;  %s405_s1 = inlined_call_operand.vmem [shape: f32[4,128], index: 1, kind: input, shape index: {}]   ;;  %s406_s0 = inlined_call_operand.vmem [shape: f32[8,4], index: 0, kind: input, shape index: {}]   ;;  %s407_s3 = inlined_call_operand.vmem [shape: f32[128,128], index: 3, kind: input, shape index: {}]   ;;  %s408_s2 = inlined_call_operand.vmem [shape: f32[1,128], index: 2, kind: input, shape index: {}]   ;;  %s409_s4 = inlined_call_operand.vmem [shape: f32[1,128], index: 4, kind: input, shape index: {}]   ;;  %s410_s5 = inlined_call_operand.vmem [shape: f32[8,128], index: 5, kind: output, shape index: {}]  }
   0x1   :  { %238 = vmatprep.subr.mxu0 %v309_v0  ;;  %v21_v1 = vld [vmem:[%s405_s1] sm:$0xf]  ;;  %240 = vmatprep.mubr.msk.f32.mxu0 %vm310_vm2, %v309_v0  ;;  %v311_v4 = vmov 0.0|0.0   ;;  %v109_v5 = vld [vmem:[%s407_s3 + $0x8] sm:$0xff]  ;;  %v110_v6 = vld [vmem:[%s407_s3 + $0x10] sm:$0xff] }
   0x2   :  { %v20_v2 = vld [vmem:[%s406_s0] sm:$0xff]  ;;  %239 = vmatpush3.msk.msra.mxu0 %vm33_vm0, %v21_v1  ;;  %278 = vmatprep.subr.bf16.mxu1 %v311_v4  ;;  %v111_v7 = vld [vmem:[%s407_s3 + $0x18] sm:$0xff]  ;;  %v113_v11 = vld [vmem:[%s407_s3 + $0x28] sm:$0xff] }
   0x3   :  { %v108_v3 = vld [vmem:[%s407_s3] sm:$0xff]  ;;  %241 = vmatmul.mubr.msk.f32.vlgmr.msra.gmra.mrb[0].mxu0 %vm29_vm1, %v20_v2  ;;  %275 = vmatprep.mubr.msk.f32.mxu1 %vm310_vm2, %v309_v0  ;;  %v282_v9 = vpack.c.bf16 %v111_v7, %v110_v6  ;;  %v114_v13 = vld [vmem:[%s407_s3 + $0x30] sm:$0xff]  ;;  %v115_v14 = vld [vmem:[%s407_s3 + $0x38] sm:$0xff] }
   0x4   :  { %v279_v8 = vpack.c.bf16 %v109_v5, %v108_v3  ;;  %v112_v10 = vld [vmem:[%s407_s3 + $0x20] sm:$0xff]  ;;  %v288_v15 = vpack.c.bf16 %v115_v14, %v114_v13  ;;  %v117_v17 = vld [vmem:[%s407_s3 + $0x48] sm:$0xff]  ;;  %v118_v19 = vld [vmem:[%s407_s3 + $0x50] sm:$0xff] }
   0x5   :  { %v285_v12 = vpack.c.bf16 %v113_v11, %v112_v10  ;;  %v116_v16 = vld [vmem:[%s407_s3 + $0x40] sm:$0xff]  ;;  %v119_v20 = vld [vmem:[%s407_s3 + $0x58] sm:$0xff]  ;;  %v121_v23 = vld [vmem:[%s407_s3 + $0x68] sm:$0xff] }
   0x6   :  { %280 = vmatpush3.bf16.msra.mxu1 %v279_v8  ;;  %v291_v18 = vpack.c.bf16 %v117_v17, %v116_v16  ;;  %v294_v21 = vpack.c.bf16 %v119_v20, %v118_v19  ;;  %v120_v22 = vld [vmem:[%s407_s3 + $0x60] sm:$0xff]  ;;  %v122_v25 = vld [vmem:[%s407_s3 + $0x70] sm:$0xff]  ;;  %v123_v26 = vld [vmem:[%s407_s3 + $0x78] sm:$0xff] }
   0x7   :  { %281 = vmatprep.subr.bf16.mxu1 %v311_v4  ;;  %v297_v24 = vpack.c.bf16 %v121_v23, %v120_v22  ;;  %v300_v27 = vpack.c.bf16 %v123_v26, %v122_v25  ;;  %v215_v28 = vld [vmem:[%s408_s2] ss:$0 sm:$0xff] }
   0x8   :  { %v218_v33 = vld [vmem:[%s409_s4] ss:$0 sm:$0xff] }
   0xa   :  { %283 = vmatpush3.bf16.msra.mxu1 %v282_v9 }
   0xb   :  { %284 = vmatprep.subr.bf16.mxu1 %v311_v4 }
   0xe   :  { %286 = vmatpush3.bf16.msra.mxu1 %v285_v12 }
   0xf   :  { %287 = vmatprep.subr.bf16.mxu1 %v311_v4 }
  0x12   :  { %289 = vmatpush3.bf16.msra.mxu1 %v288_v15 }
  0x13   :  { %290 = vmatprep.subr.bf16.mxu1 %v311_v4 }
  0x16   :  { %292 = vmatpush3.bf16.msra.mxu1 %v291_v18 }
  0x17   :  { %293 = vmatprep.subr.bf16.mxu1 %v311_v4 }
  0x1a   :  { %295 = vmatpush3.bf16.msra.mxu1 %v294_v21 }
  0x1b   :  { %296 = vmatprep.subr.bf16.mxu1 %v311_v4 }
  0x1e   :  { %298 = vmatpush3.bf16.msra.mxu1 %v297_v24 }
  0x1f   :  { %299 = vmatprep.subr.bf16.mxu1 %v311_v4 }
  0x22   :  { %301 = vmatpush3.bf16.msra.mxu1 %v300_v27 }
  0xd6   :  { %v103_v29 = vpop.f32.mrb[0].mxu0 }
  0xd7   :  { %v104_v30 = vadd.f32 %v215_v28, %v103_v29  ;;  %v242_v31 = vpop.f32.mrb[1].mxu0 }
  0xd9   :  { %v107_v32 = vmax.f32 %v104_v30, 0.0 }
  0xdb   :  { %276 = vmatmul.mubr.f32.vlgmr.msra.gmra.mrb[0].mxu1 %v107_v32 }
 0x1ae   :  { %v197_v34 = vpop.f32.mrb[0].mxu1 }
 0x1af   :  { %v198_v35 = vadd.f32 %v218_v33, %v197_v34  ;;  %v277_v36 = vpop.f32.mrb[1].mxu1 }
 0x1b1   :  { %201 = vmax.xlane.f32.xlu0 %v198_v35 }
 0x23e   :  { %v202_v37 = vpop.xlane.xlu0 %201 }
 0x23f   :  { %v203_v38 = vsub.f32 %v198_v35, %v202_v37 }
 0x241   :  { %v204_v39 = vmul.f32 1.442695, %v203_v38 }
 0x243   :  { %305 = vpow2.f32 %v204_v39 }
 0x24d   :  { %v306_v40 = vpop.eup %305 }
 0x24e   :  { %206 = vadd.xlane.f32.xlu0 %v306_v40 }
 0x2db   :  { %v207_v41 = vpop.xlane.xlu0 %206 }
 0x2dc   :  { %307 = vrcp.f32 %v207_v41 }
 0x2e6   :  { %v308_v42 = vpop.eup %307 }
 0x2e7   :  { %v209_v43 = vmul.f32 %v308_v42, %v306_v40 }
 0x2e9   :  { %210 = vst [vmem:[%s410_s5] sm:$0xff] %v209_v43 }

</bundles_post_ra>
